<compile_context>
chip_gen: v5e
topology: v5e:2x2
jax: 0.10.0
libtpu: 0.0.40
codegen_flags: <defaults>
</compile_context>

<pallas_src>
import functools

import jax
import jax.numpy as jnp
from jax import lax
from jax.experimental import pallas as pl
from jax.experimental.pallas import tpu as pltpu


def _intra_gnn_kernel(x_ref,        # VMEM (N, D) f32 : features[m]
                      w_ref,        # VMEM (N, N) f32 : initial weights[m]
                      wg_ref,       # VMEM (D, H) f32 : w_gnn{view_flag}
                      fcw_ref,      # VMEM (H, C) f32 : fc weight (transposed)
                      fcb_ref,      # VMEM (1, C) f32 : fc bias
                      wout_ref,     # VMEM (N, N) f32 : committed weights (output)
                      packed_ref,   # VMEM (8, 128) f32: packed small outputs
                      h0_s,         # VMEM (N, H) f32 : x @ w_gnn (loop invariant)
                      feat_s,       # VMEM (1, H) f32 : committed pooled feature
                      sr_s,         # VMEM (1, C) f32 : committed single_result
                      b_s,          # VMEM (1, C) f32 : committed belief b
                      u_s,          # VMEM (1, 1) f32 : committed uncertainty u
                      *, slope, classes, hidden):
    N = w_ref.shape[0]

    # ------------------------- per-graph prologue -------------------------
    # Hoisted, loop-invariant matmul (MXU) -- computed once per graph.
    h0_s[...] = jnp.dot(x_ref[...], wg_ref[...], preferred_element_type=jnp.float32)
    # Working/committed adjacency lives directly in the resident output block.
    wout_ref[...] = w_ref[...]
    feat_s[...] = jnp.zeros_like(feat_s)
    sr_s[...] = jnp.zeros_like(sr_s)
    b_s[...] = jnp.zeros_like(b_s)
    u_s[...] = jnp.zeros_like(u_s)

    # ---------------------- in-kernel refinement loop ---------------------
    def body(t, u0):
        piv = 5 * t
        W = wout_ref[...]
        row = lax.broadcasted_iota(jnp.int32, (N, N), 0)
        col = lax.broadcasted_iota(jnp.int32, (N, N), 1)
        eye = (row == col).astype(jnp.float32)

        # Structural_Enhancement (output-effective semantics, see header):
        # rows r < pivotalNum with adj[r, 0] > 0 get their column-0 entry set to 1.
        fix = jnp.logical_and(jnp.logical_and(row < piv, col == 0), W > 0.0)
        adj_s = 0.5 * jnp.where(fix, jnp.float32(1.0), W) + eye   # 0.5*SE(W) + I

        # GNN hot path: adj_s @ (x @ w_gnn); dropout = identity (eval mode).
        h = jnp.dot(adj_s, h0_s[...], preferred_element_type=jnp.float32)  # (N, H)
        h = jnp.where(h >= 0.0, h, slope * h)                              # LeakyReLU
        pooled = jnp.mean(h, axis=0, keepdims=True)                        # (1, H)
        logits = jnp.dot(pooled, fcw_ref[...],
                         preferred_element_type=jnp.float32) + fcb_ref[...]
        # Softplus (PyTorch default threshold = 20).
        sp = jnp.where(logits > 20.0, logits,
                       jnp.log1p(jnp.exp(jnp.minimum(logits, 20.0))))

        # get_U
        S = jnp.sum(sp) + jnp.float32(classes)
        b = sp / S
        u = jnp.float32(classes) / S

        # torch: `if u >= u0 or 5*t >= 40: break else: commit; t += 1`
        commit = jnp.logical_and(u < u0, piv < 40)
        wout_ref[...] = jnp.where(commit, adj_s, W)
        feat_s[...] = jnp.where(commit, pooled, feat_s[...])
        sr_s[...] = jnp.where(commit, sp, sr_s[...])
        b_s[...] = jnp.where(commit, b, b_s[...])
        u_s[...] = jnp.where(commit, jnp.full((1, 1), u), u_s[...])
        # On break, poison u0 (u is always > 0) so no later step can commit.
        return jnp.where(commit, u, jnp.float32(-1.0))

    lax.fori_loop(1, 8, body, jnp.float32(999.0))

    # ---------------- epilogue: lane-dense packed small outputs -----------
    packed_ref[...] = jnp.zeros_like(packed_ref)
    packed_ref[0:1, 0:hidden] = feat_s[...]
    packed_ref[1:2, 0:classes] = sr_s[...]
    packed_ref[2:3, 0:classes] = b_s[...]
    packed_ref[3:4, 0:1] = u_s[...]


def make_intra_gnn(M, N, D, hidden, classes, slope):
    kernel = functools.partial(_intra_gnn_kernel,
                               slope=slope, classes=classes, hidden=hidden)
    grid_spec = pltpu.PrefetchScalarGridSpec(
        num_scalar_prefetch=0,
        grid=(M,),
        in_specs=[
            pl.BlockSpec((None, N, D), lambda m: (m, 0, 0)),    # features[m]
            pl.BlockSpec((None, N, N), lambda m: (m, 0, 0)),    # weights[m]
            pl.BlockSpec((D, hidden), lambda m: (0, 0)),        # w_gnn (invariant)
            pl.BlockSpec((hidden, classes), lambda m: (0, 0)),  # fc weight
            pl.BlockSpec((1, classes), lambda m: (0, 0)),       # fc bias
        ],
        out_specs=(
            pl.BlockSpec((None, N, N), lambda m: (m, 0, 0)),    # new weights
            pl.BlockSpec((None, 8, 128), lambda m: (m, 0, 0)),  # packed outputs
        ),
        scratch_shapes=[
            pltpu.VMEM((N, hidden), jnp.float32),   # h0 = x @ w_gnn
            pltpu.VMEM((1, hidden), jnp.float32),   # committed pooled feature
            pltpu.VMEM((1, classes), jnp.float32),  # committed single_result
            pltpu.VMEM((1, classes), jnp.float32),  # committed belief b
            pltpu.VMEM((1, 1), jnp.float32),        # committed uncertainty u
        ],
    )
    return pl.pallas_call(
        kernel,
        grid_spec=grid_spec,
        out_shape=(
            jax.ShapeDtypeStruct((M, N, N), jnp.float32),
            jax.ShapeDtypeStruct((M, 8, 128), jnp.float32),
        ),
        compiler_params=pltpu.CompilerParams(
            dimension_semantics=("parallel",)),
    )


def intra_gnn_forward(features, weights, view_flag, params, *, hidden, classes, slope):
    M, N, D = features.shape
    assert weights.shape == (M, N, N)
    assert N == D, "reference code adds eye(D) to an (N,N) adjacency -> needs N == D"
    assert N >= 40, "pivotalNum can reach 40 in the reference code"
    assert hidden <= 128 and classes <= 128, "packed output layout uses 128 lanes"

    w_gnn = params["w_gnn"][view_flag]
    fc_w = params["fc_w"]          # (hidden, classes)
    fc_b = params["fc_b"]          # (1, classes)

    call = make_intra_gnn(M, N, D, hidden, classes, slope)
    new_weights, packed = call(features, weights, w_gnn, fc_w, fc_b)

    aft_feat = packed[:, 0, :hidden]
    single_results = packed[:, 1, :classes]
    bb = packed[:, 2, :classes]
    uu = packed[:, 3, 0]
    return aft_feat, new_weights, single_results, bb, uu


if __name__ == "__main__":
    # Small shapes consistent with the module: M graphs, N nodes == D raw feats.
    M = 2
    N = D = 48                  # raw_features_dim == num nodes (>= 40)
    HIDDEN = 32
    CLASSES = 8
    SLOPE = 0.2
    VIEW_FLAG = 0

    key = jax.random.PRNGKey(0)
    k_wg, k_fcw, k_fcb, k_x, k_w, k_mask = jax.random.split(key, 6)

    # Deterministic parameter init (kaiming-normal-like for w_gnn{0,1,2}).
    gain = (2.0 / (1.0 + SLOPE ** 2)) ** 0.5
    std = gain / (HIDDEN ** 0.5)
    params = {
        "w_gnn": jax.random.normal(k_wg, (3, D, HIDDEN), jnp.float32) * std,
        "fc_w": jax.random.normal(k_fcw, (HIDDEN, CLASSES), jnp.float32) / (HIDDEN ** 0.5),
        "fc_b": (jax.random.normal(k_fcb, (1, CLASSES), jnp.float32) * 0.1),
    }

    # Deterministic example inputs.
    features = jax.random.normal(k_x, (M, N, D), jnp.float32)
    dense = jax.random.uniform(k_w, (M, N, N), jnp.float32)
    sparsity = (jax.random.uniform(k_mask, (M, N, N)) > 0.5).astype(jnp.float32)
    weights = dense * sparsity  # non-negative, sparse-ish adjacency weights

    out = intra_gnn_forward(features, weights, VIEW_FLAG, params,
                            hidden=HIDDEN, classes=CLASSES, slope=SLOPE)
    out = jax.block_until_ready(out)
    aft_feat, new_weights, single_results, bb, uu = out
    assert aft_feat.shape == (M, HIDDEN)
    assert new_weights.shape == (M, N, N)
    assert single_results.shape == (M, CLASSES)
    assert bb.shape == (M, CLASSES)
    assert uu.shape == (M,)
    print("KERNEL_OK")
</pallas_src>

<mosaic_0001>
module attributes {stable_mosaic.version = 11 : i64} {
  func.func @_intra_gnn_kernel(%arg0: i32, %arg1: memref<1x48x48xf32, #tpu.memory_space<vmem>>, %arg2: memref<1x48x48xf32, #tpu.memory_space<vmem>>, %arg3: memref<48x32xf32, #tpu.memory_space<vmem>>, %arg4: memref<32x8xf32, #tpu.memory_space<vmem>>, %arg5: memref<1x8xf32, #tpu.memory_space<vmem>>, %arg6: memref<1x48x48xf32, #tpu.memory_space<vmem>>, %arg7: memref<1x8x128xf32, #tpu.memory_space<vmem>>, %arg8: memref<48x32xf32, #tpu.memory_space<vmem>>, %arg9: memref<1x32xf32, #tpu.memory_space<vmem>>, %arg10: memref<1x8xf32, #tpu.memory_space<vmem>>, %arg11: memref<1x8xf32, #tpu.memory_space<vmem>>, %arg12: memref<1x1xf32, #tpu.memory_space<vmem>>) attributes {dimension_semantics = [#tpu.dimension_semantics<parallel>], iteration_bounds = array<i64: 2>, scalar_prefetch = 0 : i64, scratch_operands = 5 : i64, tpu.core_type = #tpu.core_type<tc>, window_params = [{transform_indices = @transform_0, window_bounds = array<i64: 1, 48, 48>}, {transform_indices = @transform_1, window_bounds = array<i64: 1, 48, 48>}, {pipeline_mode = #tpu.pipeline_mode<synchronous>, transform_indices = @transform_2, window_bounds = array<i64: 48, 32>}, {pipeline_mode = #tpu.pipeline_mode<synchronous>, transform_indices = @transform_3, window_bounds = array<i64: 32, 8>}, {pipeline_mode = #tpu.pipeline_mode<synchronous>, transform_indices = @transform_4, window_bounds = array<i64: 1, 8>}, {transform_indices = @transform_5, window_bounds = array<i64: 1, 48, 48>}, {transform_indices = @transform_6, window_bounds = array<i64: 1, 8, 128>}]} {
    %c0 = arith.constant 0 : index
    %c0_0 = arith.constant 0 : index
    %c0_1 = arith.constant 0 : index
    %0 = vector.load %arg1[%c0, %c0_0, %c0_1] : memref<1x48x48xf32, #tpu.memory_space<vmem>>, vector<1x48x48xf32>
    %1 = vector.shape_cast %0 : vector<1x48x48xf32> to vector<48x48xf32>
    %c0_2 = arith.constant 0 : index
    %c0_3 = arith.constant 0 : index
    %2 = vector.load %arg3[%c0_2, %c0_3] : memref<48x32xf32, #tpu.memory_space<vmem>>, vector<48x32xf32>
    %cst = arith.constant dense<0.000000e+00> : vector<48x32xf32>
    %3 = tpu.matmul %1, %2, %cst {dimension_numbers = #tpu.dot_dimension_numbers<[1], [0], [0], [1], [0, 0, 1, 1], [], []>} : vector<48x48xf32>, vector<48x32xf32>, vector<48x32xf32> -> vector<48x32xf32>
    %c0_4 = arith.constant 0 : index
    %c0_5 = arith.constant 0 : index
    %4 = vector.load %arg8[%c0_4, %c0_5] : memref<48x32xf32, #tpu.memory_space<vmem>>, vector<48x32xf32>
    tpu.vector_store %arg8[%c0_4, %c0_5], %3 {strides = array<i32>} : memref<48x32xf32, #tpu.memory_space<vmem>>, vector<48x32xf32>,
    %c0_6 = arith.constant 0 : index
    %c0_7 = arith.constant 0 : index
    %c0_8 = arith.constant 0 : index
    %5 = vector.load %arg2[%c0_6, %c0_7, %c0_8] : memref<1x48x48xf32, #tpu.memory_space<vmem>>, vector<1x48x48xf32>
    %6 = vector.shape_cast %5 : vector<1x48x48xf32> to vector<48x48xf32>
    %c0_9 = arith.constant 0 : index
    %c0_10 = arith.constant 0 : index
    %c0_11 = arith.constant 0 : index
    %7 = vector.load %arg6[%c0_9, %c0_10, %c0_11] : memref<1x48x48xf32, #tpu.memory_space<vmem>>, vector<1x48x48xf32>
    %8 = vector.shape_cast %7 : vector<1x48x48xf32> to vector<48x48xf32>
    %9 = vector.shape_cast %6 : vector<48x48xf32> to vector<1x48x48xf32>
    tpu.vector_store %arg6[%c0_9, %c0_10, %c0_11], %9 {strides = array<i32>} : memref<1x48x48xf32, #tpu.memory_space<vmem>>, vector<1x48x48xf32>,
    %cst_12 = arith.constant 0.000000e+00 : f32
    %10 = vector.broadcast %cst_12 : f32 to vector<1x32xf32>
    %c0_13 = arith.constant 0 : index
    %c0_14 = arith.constant 0 : index
    %11 = vector.load %arg9[%c0_13, %c0_14] : memref<1x32xf32, #tpu.memory_space<vmem>>, vector<1x32xf32>
    tpu.vector_store %arg9[%c0_13, %c0_14], %10 {strides = array<i32>} : memref<1x32xf32, #tpu.memory_space<vmem>>, vector<1x32xf32>,
    %cst_15 = arith.constant 0.000000e+00 : f32
    %12 = vector.broadcast %cst_15 : f32 to vector<1x8xf32>
    %c0_16 = arith.constant 0 : index
    %c0_17 = arith.constant 0 : index
    %13 = vector.load %arg10[%c0_16, %c0_17] : memref<1x8xf32, #tpu.memory_space<vmem>>, vector<1x8xf32>
    tpu.vector_store %arg10[%c0_16, %c0_17], %12 {strides = array<i32>} : memref<1x8xf32, #tpu.memory_space<vmem>>, vector<1x8xf32>,
    %cst_18 = arith.constant 0.000000e+00 : f32
    %14 = vector.broadcast %cst_18 : f32 to vector<1x8xf32>
    %c0_19 = arith.constant 0 : index
    %c0_20 = arith.constant 0 : index
    %15 = vector.load %arg11[%c0_19, %c0_20] : memref<1x8xf32, #tpu.memory_space<vmem>>, vector<1x8xf32>
    tpu.vector_store %arg11[%c0_19, %c0_20], %14 {strides = array<i32>} : memref<1x8xf32, #tpu.memory_space<vmem>>, vector<1x8xf32>,
    %cst_21 = arith.constant 0.000000e+00 : f32
    %16 = vector.broadcast %cst_21 : f32 to vector<1x1xf32>
    %c0_22 = arith.constant 0 : index
    %c0_23 = arith.constant 0 : index
    %17 = vector.load %arg12[%c0_22, %c0_23] : memref<1x1xf32, #tpu.memory_space<vmem>>, vector<1x1xf32>
    tpu.vector_store %arg12[%c0_22, %c0_23], %16 {strides = array<i32>} : memref<1x1xf32, #tpu.memory_space<vmem>>, vector<1x1xf32>,
    %cst_24 = arith.constant 9.990000e+02 : f32
    %c1_i32 = arith.constant 1 : i32
    %c7_i32 = arith.constant 7 : i32
    %18 = arith.addi %c1_i32, %c7_i32 : i32
    %c1_i32_25 = arith.constant 1 : i32
    %19 = scf.for %arg13 = %c1_i32 to %18 step %c1_i32_25 iter_args(%arg14 = %cst_24) -> (f32)  : i32 {
      %c5_i32 = arith.constant 5 : i32
      %40 = arith.muli %c5_i32, %arg13 : i32
      %c0_48 = arith.constant 0 : index
      %c0_49 = arith.constant 0 : index
      %c0_50 = arith.constant 0 : index
      %41 = vector.load %arg6[%c0_48, %c0_49, %c0_50] : memref<1x48x48xf32, #tpu.memory_space<vmem>>, vector<1x48x48xf32>
      %42 = vector.shape_cast %41 : vector<1x48x48xf32> to vector<48x48xf32>
      %43 = tpu.iota {dimensions = array<i32: 0>} : vector<48x48xi32>
      %44 = tpu.iota {dimensions = array<i32: 1>} : vector<48x48xi32>
      %45 = arith.cmpi eq, %43, %44 : vector<48x48xi32>
      %46 = arith.extui %45 : vector<48x48xi1> to vector<48x48xi32>
      %47 = arith.sitofp %46 : vector<48x48xi32> to vector<48x48xf32>
      %48 = vector.broadcast %40 : i32 to vector<48x48xi32>
      %49 = arith.cmpi slt, %43, %48 : vector<48x48xi32>
      %c0_i32 = arith.constant 0 : i32
      %50 = vector.broadcast %c0_i32 : i32 to vector<48x48xi32>
      %51 = arith.cmpi eq, %44, %50 : vector<48x48xi32>
      %52 = arith.andi %49, %51 : vector<48x48xi1>
      %cst_51 = arith.constant 0.000000e+00 : f32
      %53 = vector.broadcast %cst_51 : f32 to vector<48x48xf32>
      %54 = arith.cmpf ogt, %42, %53 : vector<48x48xf32>
      %55 = arith.andi %52, %54 : vector<48x48xi1>
      %cst_52 = arith.constant 1.000000e+00 : f32
      %56 = vector.broadcast %cst_52 : f32 to vector<48x48xf32>
      %57 = arith.select %55, %56, %42 : vector<48x48xi1>, vector<48x48xf32>
      %cst_53 = arith.constant 5.000000e-01 : f32
      %58 = vector.broadcast %cst_53 : f32 to vector<48x48xf32>
      %59 = arith.mulf %58, %57 : vector<48x48xf32>
      %60 = arith.addf %59, %47 : vector<48x48xf32>
      %c0_54 = arith.constant 0 : index
      %c0_55 = arith.constant 0 : index
      %61 = vector.load %arg8[%c0_54, %c0_55] : memref<48x32xf32, #tpu.memory_space<vmem>>, vector<48x32xf32>
      %cst_56 = arith.constant dense<0.000000e+00> : vector<48x32xf32>
      %62 = tpu.matmul %60, %61, %cst_56 {dimension_numbers = #tpu.dot_dimension_numbers<[1], [0], [0], [1], [0, 0, 1, 1], [], []>} : vector<48x48xf32>, vector<48x32xf32>, vector<48x32xf32> -> vector<48x32xf32>
      %cst_57 = arith.constant 0.000000e+00 : f32
      %63 = vector.broadcast %cst_57 : f32 to vector<48x32xf32>
      %64 = arith.cmpf oge, %62, %63 : vector<48x32xf32>
      %cst_58 = arith.constant 2.000000e-01 : f32
      %65 = vector.broadcast %cst_58 : f32 to vector<48x32xf32>
      %66 = arith.mulf %65, %62 : vector<48x32xf32>
      %67 = arith.select %64, %62, %66 : vector<48x32xi1>, vector<48x32xf32>
      %cst_59 = arith.constant dense<0.000000e+00> : vector<32xf32>
      %68 = vector.multi_reduction <add>, %67, %cst_59 [0] : vector<48x32xf32> to vector<32xf32>
      %69 = vector.shape_cast %68 : vector<32xf32> to vector<1x32xf32>
      %cst_60 = arith.constant 4.800000e+01 : f32
      %70 = vector.broadcast %cst_60 : f32 to vector<1x32xf32>
      %71 = arith.divf %69, %70 : vector<1x32xf32>
      %c0_61 = arith.constant 0 : index
      %c0_62 = arith.constant 0 : index
      %72 = vector.load %arg4[%c0_61, %c0_62] : memref<32x8xf32, #tpu.memory_space<vmem>>, vector<32x8xf32>
      %cst_63 = arith.constant dense<0.000000e+00> : vector<1x8xf32>
      %73 = tpu.matmul %71, %72, %cst_63 {dimension_numbers = #tpu.dot_dimension_numbers<[1], [0], [0], [1], [0, 0, 1, 1], [], []>} : vector<1x32xf32>, vector<32x8xf32>, vector<1x8xf32> -> vector<1x8xf32>
      %c0_64 = arith.constant 0 : index
      %c0_65 = arith.constant 0 : index
      %74 = vector.load %arg5[%c0_64, %c0_65] : memref<1x8xf32, #tpu.memory_space<vmem>>, vector<1x8xf32>
      %75 = arith.addf %73, %74 : vector<1x8xf32>
      %cst_66 = arith.constant 2.000000e+01 : f32
      %76 = vector.broadcast %cst_66 : f32 to vector<1x8xf32>
      %77 = arith.cmpf ogt, %75, %76 : vector<1x8xf32>
      %cst_67 = arith.constant 2.000000e+01 : f32
      %78 = vector.broadcast %cst_67 : f32 to vector<1x8xf32>
      %79 = arith.minimumf %75, %78 : vector<1x8xf32>
      %80 = math.exp %79 : vector<1x8xf32>
      %81 = math.log1p %80 : vector<1x8xf32>
      %82 = arith.select %77, %75, %81 : vector<1x8xi1>, vector<1x8xf32>
      %83 = vector.shape_cast %82 : vector<1x8xf32> to vector<1x1x8xf32>
      %cst_68 = arith.constant dense<0.000000e+00> : vector<1xf32>
      %84 = vector.multi_reduction <add>, %83, %cst_68 [1, 2] : vector<1x1x8xf32> to vector<1xf32>
      %85 = vector.shape_cast %84 : vector<1xf32> to vector<1x1x1xf32>
      %86 = vector.extract %85[0, 0, 0] : f32 from vector<1x1x1xf32>
      %cst_69 = arith.constant 8.000000e+00 : f32
      %87 = arith.addf %86, %cst_69 : f32
      %88 = vector.broadcast %87 : f32 to vector<1x8xf32>
      %89 = arith.divf %82, %88 : vector<1x8xf32>
      %cst_70 = arith.constant 8.000000e+00 : f32
      %90 = arith.divf %cst_70, %87 : f32
      %91 = arith.cmpf olt, %90, %arg14 : f32
      %c40_i32 = arith.constant 40 : i32
      %92 = arith.cmpi slt, %40, %c40_i32 : i32
      %93 = arith.andi %91, %92 : i1
      %94 = arith.select %93, %60, %42 : vector<48x48xf32>
      %c0_71 = arith.constant 0 : index
      %c0_72 = arith.constant 0 : index
      %c0_73 = arith.constant 0 : index
      %95 = vector.load %arg6[%c0_71, %c0_72, %c0_73] : memref<1x48x48xf32, #tpu.memory_space<vmem>>, vector<1x48x48xf32>
      %96 = vector.shape_cast %95 : vector<1x48x48xf32> to vector<48x48xf32>
      %97 = vector.shape_cast %94 : vector<48x48xf32> to vector<1x48x48xf32>
      tpu.vector_store %arg6[%c0_71, %c0_72, %c0_73], %97 {strides = array<i32>} : memref<1x48x48xf32, #tpu.memory_space<vmem>>, vector<1x48x48xf32>,
      %c0_74 = arith.constant 0 : index
      %c0_75 = arith.constant 0 : index
      %98 = vector.load %arg9[%c0_74, %c0_75] : memref<1x32xf32, #tpu.memory_space<vmem>>, vector<1x32xf32>
      %99 = arith.select %93, %71, %98 : vector<1x32xf32>
      %c0_76 = arith.constant 0 : index
      %c0_77 = arith.constant 0 : index
      %100 = vector.load %arg9[%c0_76, %c0_77] : memref<1x32xf32, #tpu.memory_space<vmem>>, vector<1x32xf32>
      tpu.vector_store %arg9[%c0_76, %c0_77], %99 {strides = array<i32>} : memref<1x32xf32, #tpu.memory_space<vmem>>, vector<1x32xf32>,
      %c0_78 = arith.constant 0 : index
      %c0_79 = arith.constant 0 : index
      %101 = vector.load %arg10[%c0_78, %c0_79] : memref<1x8xf32, #tpu.memory_space<vmem>>, vector<1x8xf32>
      %102 = arith.select %93, %82, %101 : vector<1x8xf32>
      %c0_80 = arith.constant 0 : index
      %c0_81 = arith.constant 0 : index
      %103 = vector.load %arg10[%c0_80, %c0_81] : memref<1x8xf32, #tpu.memory_space<vmem>>, vector<1x8xf32>
      tpu.vector_store %arg10[%c0_80, %c0_81], %102 {strides = array<i32>} : memref<1x8xf32, #tpu.memory_space<vmem>>, vector<1x8xf32>,
      %c0_82 = arith.constant 0 : index
      %c0_83 = arith.constant 0 : index
      %104 = vector.load %arg11[%c0_82, %c0_83] : memref<1x8xf32, #tpu.memory_space<vmem>>, vector<1x8xf32>
      %105 = arith.select %93, %89, %104 : vector<1x8xf32>
      %c0_84 = arith.constant 0 : index
      %c0_85 = arith.constant 0 : index
      %106 = vector.load %arg11[%c0_84, %c0_85] : memref<1x8xf32, #tpu.memory_space<vmem>>, vector<1x8xf32>
      tpu.vector_store %arg11[%c0_84, %c0_85], %105 {strides = array<i32>} : memref<1x8xf32, #tpu.memory_space<vmem>>, vector<1x8xf32>,
      %107 = vector.broadcast %90 : f32 to vector<1x1xf32>
      %c0_86 = arith.constant 0 : index
      %c0_87 = arith.constant 0 : index
      %108 = vector.load %arg12[%c0_86, %c0_87] : memref<1x1xf32, #tpu.memory_space<vmem>>, vector<1x1xf32>
      %109 = arith.select %93, %107, %108 : vector<1x1xf32>
      %c0_88 = arith.constant 0 : index
      %c0_89 = arith.constant 0 : index
      %110 = vector.load %arg12[%c0_88, %c0_89] : memref<1x1xf32, #tpu.memory_space<vmem>>, vector<1x1xf32>
      tpu.vector_store %arg12[%c0_88, %c0_89], %109 {strides = array<i32>} : memref<1x1xf32, #tpu.memory_space<vmem>>, vector<1x1xf32>,
      %cst_90 = arith.constant -1.000000e+00 : f32
      %111 = arith.select %93, %90, %cst_90 : f32
      scf.yield %111 : f32
    }
    %c7_i32_26 = arith.constant 7 : i32
    %cst_27 = arith.constant 0.000000e+00 : f32
    %20 = vector.broadcast %cst_27 : f32 to vector<8x128xf32>
    %c0_28 = arith.constant 0 : index
    %c0_29 = arith.constant 0 : index
    %c0_30 = arith.constant 0 : index
    %21 = vector.load %arg7[%c0_28, %c0_29, %c0_30] : memref<1x8x128xf32, #tpu.memory_space<vmem>>, vector<1x8x128xf32>
    %22 = vector.shape_cast %21 : vector<1x8x128xf32> to vector<8x128xf32>
    %23 = vector.shape_cast %20 : vector<8x128xf32> to vector<1x8x128xf32>
    tpu.vector_store %arg7[%c0_28, %c0_29, %c0_30], %23 {strides = array<i32>} : memref<1x8x128xf32, #tpu.memory_space<vmem>>, vector<1x8x128xf32>,
    %c0_31 = arith.constant 0 : index
    %c0_32 = arith.constant 0 : index
    %24 = vector.load %arg9[%c0_31, %c0_32] : memref<1x32xf32, #tpu.memory_space<vmem>>, vector<1x32xf32>
    %c0_33 = arith.constant 0 : index
    %c0_34 = arith.constant 0 : index
    %c0_35 = arith.constant 0 : index
    %25 = vector.load %arg7[%c0_33, %c0_34, %c0_35] : memref<1x8x128xf32, #tpu.memory_space<vmem>>, vector<1x1x32xf32>
    %26 = vector.shape_cast %25 : vector<1x1x32xf32> to vector<1x32xf32>
    %27 = vector.shape_cast %24 : vector<1x32xf32> to vector<1x1x32xf32>
    tpu.vector_store %arg7[%c0_33, %c0_34, %c0_35], %27 {strides = array<i32>} : memref<1x8x128xf32, #tpu.memory_space<vmem>>, vector<1x1x32xf32>,
    %c0_36 = arith.constant 0 : index
    %c0_37 = arith.constant 0 : index
    %28 = vector.load %arg10[%c0_36, %c0_37] : memref<1x8xf32, #tpu.memory_space<vmem>>, vector<1x8xf32>
    %c0_38 = arith.constant 0 : index
    %c1 = arith.constant 1 : index
    %c0_39 = arith.constant 0 : index
    %29 = vector.load %arg7[%c0_38, %c1, %c0_39] : memref<1x8x128xf32, #tpu.memory_space<vmem>>, vector<1x1x8xf32>
    %30 = vector.shape_cast %29 : vector<1x1x8xf32> to vector<1x8xf32>
    %31 = vector.shape_cast %28 : vector<1x8xf32> to vector<1x1x8xf32>
    tpu.vector_store %arg7[%c0_38, %c1, %c0_39], %31 {strides = array<i32>} : memref<1x8x128xf32, #tpu.memory_space<vmem>>, vector<1x1x8xf32>,
    %c0_40 = arith.constant 0 : index
    %c0_41 = arith.constant 0 : index
    %32 = vector.load %arg11[%c0_40, %c0_41] : memref<1x8xf32, #tpu.memory_space<vmem>>, vector<1x8xf32>
    %c0_42 = arith.constant 0 : index
    %c2 = arith.constant 2 : index
    %c0_43 = arith.constant 0 : index
    %33 = vector.load %arg7[%c0_42, %c2, %c0_43] : memref<1x8x128xf32, #tpu.memory_space<vmem>>, vector<1x1x8xf32>
    %34 = vector.shape_cast %33 : vector<1x1x8xf32> to vector<1x8xf32>
    %35 = vector.shape_cast %32 : vector<1x8xf32> to vector<1x1x8xf32>
    tpu.vector_store %arg7[%c0_42, %c2, %c0_43], %35 {strides = array<i32>} : memref<1x8x128xf32, #tpu.memory_space<vmem>>, vector<1x1x8xf32>,
    %c0_44 = arith.constant 0 : index
    %c0_45 = arith.constant 0 : index
    %36 = vector.load %arg12[%c0_44, %c0_45] : memref<1x1xf32, #tpu.memory_space<vmem>>, vector<1x1xf32>
    %c0_46 = arith.constant 0 : index
    %c3 = arith.constant 3 : index
    %c0_47 = arith.constant 0 : index
    %37 = vector.load %arg7[%c0_46, %c3, %c0_47] : memref<1x8x128xf32, #tpu.memory_space<vmem>>, vector<1x1x1xf32>
    %38 = vector.shape_cast %37 : vector<1x1x1xf32> to vector<1x1xf32>
    %39 = vector.shape_cast %36 : vector<1x1xf32> to vector<1x1x1xf32>
    tpu.vector_store %arg7[%c0_46, %c3, %c0_47], %39 {strides = array<i32>} : memref<1x8x128xf32, #tpu.memory_space<vmem>>, vector<1x1x1xf32>,
    return
  }
  func.func @transform_0(%arg0: i32) -> (i32, i32, i32) {
    %c0_i32 = arith.constant 0 : i32
    %c0_i32_0 = arith.constant 0 : i32
    %c0_i32_1 = arith.constant 0 : i32
    return %arg0, %c0_i32, %c0_i32_0 : i32, i32, i32
  }
  func.func @transform_1(%arg0: i32) -> (i32, i32, i32) {
    %c0_i32 = arith.constant 0 : i32
    %c0_i32_0 = arith.constant 0 : i32
    %c0_i32_1 = arith.constant 0 : i32
    return %arg0, %c0_i32, %c0_i32_0 : i32, i32, i32
  }
  func.func @transform_2(%arg0: i32) -> (i32, i32) {
    %c0_i32 = arith.constant 0 : i32
    %c0_i32_0 = arith.constant 0 : i32
    %c0_i32_1 = arith.constant 0 : i32
    return %c0_i32, %c0_i32_0 : i32, i32
  }
  func.func @transform_3(%arg0: i32) -> (i32, i32) {
    %c0_i32 = arith.constant 0 : i32
    %c0_i32_0 = arith.constant 0 : i32
    %c0_i32_1 = arith.constant 0 : i32
    return %c0_i32, %c0_i32_0 : i32, i32
  }
  func.func @transform_4(%arg0: i32) -> (i32, i32) {
    %c0_i32 = arith.constant 0 : i32
    %c0_i32_0 = arith.constant 0 : i32
    %c0_i32_1 = arith.constant 0 : i32
    return %c0_i32, %c0_i32_0 : i32, i32
  }
  func.func @transform_5(%arg0: i32) -> (i32, i32, i32) {
    %c0_i32 = arith.constant 0 : i32
    %c0_i32_0 = arith.constant 0 : i32
    %c0_i32_1 = arith.constant 0 : i32
    return %arg0, %c0_i32, %c0_i32_0 : i32, i32, i32
  }
  func.func @transform_6(%arg0: i32) -> (i32, i32, i32) {
    %c0_i32 = arith.constant 0 : i32
    %c0_i32_0 = arith.constant 0 : i32
    %c0_i32_1 = arith.constant 0 : i32
    return %arg0, %c0_i32, %c0_i32_0 : i32, i32, i32
  }
}

</mosaic_0001>

<bundles_post_ra>
// kernel: tpu_custom_call.1
= control target key start
LH: loop header
LB: loop body
LE: loop exit
PB: predicated region body
PF: predicated region fallthrough
CT: control target
= control target key end

     0   :  { %s1755_s0 = inlined_call_operand.hbm [shape: f32[2,48,48], index: 0, kind: input, shape index: {}]   ;;  %s1756_s1 = inlined_call_operand.hbm [shape: f32[2,48,48], index: 1, kind: input, shape index: {}]   ;;  %s1757_s2 = inlined_call_operand.vmem [shape: f32[48,32], index: 2, kind: input, shape index: {}]   ;;  %s1758_s3 = inlined_call_operand.vmem [shape: f32[32,8], index: 3, kind: input, shape index: {}]   ;;  %s1759_s4 = inlined_call_operand.vmem [shape: f32[1,8], index: 4, kind: input, shape index: {}]   ;;  %s1760_s5 = inlined_call_operand.hbm [shape: f32[2,48,48], index: 5, kind: output, shape index: {0}]   ;;  %s1761_s6 = inlined_call_operand.hbm [shape: f32[2,8,128], index: 6, kind: output, shape index: {1}]  }
   0x1   :  { %1768 = sst [smem:[#allocation22_spill]] %s1755_s0 }
   0x2   :  { %12 = vsyncpa [#allocation8], 0 }
   0x3   :  { %14 = vsyncpa [#allocation8 + $0x1], 0 }
   0x4   :  { %15 = vsyncpa [#allocation11], 0 }
   0x5   :  { %17 = vsyncpa [#allocation11 + $0x1], 0 }
   0x6   :  { %18 = vsyncpa [#allocation9], 0 }
   0x7   :  { %20 = vsyncpa [#allocation9 + $0x1], 0 }
   0x8   :  { %21 = vsyncpa [#allocation14], 0 }
   0x9   :  { %23 = vsyncpa [#allocation14 + $0x1], 0  ;;  %s1286_s21 = smov 0   ;;  %s1288_s22 = smov 0  }
   0xa   :  { %s1290_s23 = smov 0   ;;  %s1292_s24 = smov 0  }
   0xb LB: > { %1769 = sst [smem:[#allocation19_spill]] %s1230_s23  ;;  %s1307_s25 = sadd.s32 4294967295, %s1234_s24   ;;  %s1234_s24 = sphi %s1292_s24, %s1784_s24   ;;  %s1230_s23 = sphi %s1290_s23, %s1786_s23   ;;  %s1226_s22 = sphi %s1288_s22, %s1788_s22   ;;  %s1222_s21 = sphi %s1286_s21, %s1787_s21  }
   0xc   : > { %s904_s26 = sadd.s32 4294967294, %s1234_s24   ;;  %s1311_s27 = sadd.s32 1, %s1234_s24  }
   0xd   : > { %1770 = sst [smem:[#allocation20_spill]] %s1311_s27  ;;  %s36_s28 = sadd.s32 1, %s1230_s23 }
   0xe   : > { %s33_s29 = ssub.s32 %s1234_s24, %s1311_s27  ;;  %p43_p0 = scmp.ne.s32.totalorder %s1230_s23, %s1226_s22 }
   0xf   : > { %p34_p1 = scmp.eq.s32.totalorder %s33_s29, 0  ;;  %p44_p2 = scmp.eq.s32.totalorder %s1234_s24, 0 }
  0x10   : > { %p49_p3 = scmp.ne.s32.totalorder %s1226_s22, %s1222_s21  ;;  %p50_p4 = scmp.eq.s32.totalorder %s1307_s25, 0 }
  0x11   : > { %s1323_s30 = scalar_select %p34_p1, %s1230_s23, %s36_s28  }
  0x12   : > { %p45_p5 = por %p44_p2, %p43_p0  ;;  %p1325_p6 = por %p50_p4, %p49_p3 }
  0x13   : > { %1771 = sst [smem:[#allocation21_spill]] %s1323_s30  ;;  %p162_p7 = scmp.eq.s32.totalorder %s1307_s25, 1 }
  0x14   : > { %p168_p8 = scmp.eq.s32.totalorder %s904_s26, 1  ;;  %p906_p9 = scmp.ge.s32.totalorder %s1234_s24, 2 }
  0x15   : > { %p999_p10 = scmp.lt.s32.totalorder %s1234_s24, 2  ;;  %p1332_p11 = por %p162_p7, %p43_p0 }
  0x16   : > { %p1336_p12 = por %p168_p8, %p49_p3  ;;  %s1341_s10 = sand.u32 1, %s1230_s23  }
  0x17   : > { %s1762_s11 = smul.u32 48, %s1234_s24  ;;  %s1775_s0 = sld [smem:[#allocation22_spill]] }
  0x18   : > { %s1763_s12 = smul.u32 48, %s1341_s10  ;;  %p1350_p13 = pnand %p999_p10, %p45_p5 }
  0x19   : > { %s224_s20 = scalar_lea.sflag [#allocation8], %s1341_s10 }
  0x1a   : > { %s227_s18 = scalar_lea.vmem [#allocation7], %s1763_s12  ;;  %p1068_p1 = pneg %p1350_p13 }
  0x1b   : > { %s235_s19 = sshll.u32 %s227_s18, 4  ;;  %s236_s19 = int_to_ptr.vmem [resolvable:$true] %s235_s19 }
  0x1d   : > { %s232_s15 = scalar_lea.hbm %s1775_s0, %s1762_s11  ;;  %s1071_s14 = scalar_lea.hbm %s1775_s0, 96 }
  0x1e   : > { %s233_s17 = sshll.u32 %s232_s15, 4  ;;  %s234_s17 = int_to_ptr.hbm [resolvable:$true] %s233_s17 }
  0x1f   : > { %s1064_s26 = sshra.s32 %s234_s17, 4  ;;  %s1065_s26 = int_to_ptr.hbm [resolvable:$true] %s1064_s26 }
  0x20   : > { %s1066_s28 = scalar_lea.hbm %s1065_s26, 48  ;;  %p1072_p4 = scmp.lt.s32.totalorder %s1065_s26, %s1775_s0 }
  0x21   : > { %p1067_p0 = scmp.ne.s32.totalorder %s1065_s26, %s1066_s28  ;;  %p1073_p5 = scmp.lt.s32.totalorder %s1071_s14, %s1066_s28 }
  0x23   : > { %p1069_p2 = pnand %p1068_p1, %p1067_p0  ;;  %p1074_p7 = por %p1073_p5, %p1072_p4 }
  0x25   : > { %p1070_p3 = pneg %p1069_p2 }
  0x27   : > { %p1075_p8 = pnand %p1074_p7, %p1070_p3 }
  0x29   : > { %1078 = shalt.err (!%p1075_p8)
}
  0x2a   : > { %s1244_s18 = smov 128   ;;  %s1245_s12 = smov 8  }
  0x2b   : > { %988 = dma.hbm_to_vmem [thread:$0]  (!%p1350_p13), %s234_s17, 768, %s236_s19, %s224_s20, %s1244_s18, %s1244_s18, %s1245_s12  }
  0x2c   : > { %p909_p10 = scmp.ge.s32.totalorder %s1234_s24, 1  ;;  %p265_p0 = scmp.lt.s32.totalorder %s1234_s24, 3 }
  0x2d   : > { %s1778_s26 = smul.u32 48, %s1234_s24  ;;  %s246_s23 = scalar_lea.sflag [#allocation11], %s1341_s10 }
  0x2e   : > { %p1372_p2 = pnand %p909_p10, %p265_p0  ;;  %s1779_s15 = smul.u32 48, %s1341_s10 }
  0x2f   : > { %s254_s13 = scalar_lea.hbm %s1756_s1, %s1778_s26  ;;  %s1101_s28 = scalar_lea.hbm %s1756_s1, 96 }
  0x30   : > { %s255_s14 = sshll.u32 %s254_s13, 4  ;;  %s249_s0 = scalar_lea.vmem [#allocation10], %s1779_s15  ;;  %s256_s14 = int_to_ptr.hbm [resolvable:$true] %s255_s14 }
  0x31   : > { %s257_s30 = sshll.u32 %s249_s0, 4  ;;  %s1094_s27 = sshra.s32 %s256_s14, 4  ;;  %s258_s30 = int_to_ptr.vmem [resolvable:$true] %s257_s30  ;;  %s1095_s27 = int_to_ptr.hbm [resolvable:$true] %s1094_s27 }
  0x32   : > { %s1096_s17 = scalar_lea.hbm %s1095_s27, 48  ;;  %p1102_p7 = scmp.lt.s32.totalorder %s1095_s27, %s1756_s1 }
  0x33   : > { %p1097_p3 = scmp.ne.s32.totalorder %s1095_s27, %s1096_s17  ;;  %p1103_p8 = scmp.lt.s32.totalorder %s1101_s28, %s1096_s17 }
  0x35   : > { %p1099_p4 = pnand %p1097_p3, %p1068_p1  ;;  %p1104_p10 = por %p1103_p8, %p1102_p7 }
  0x37   : > { %p1100_p5 = pneg %p1099_p4 }
  0x39   : > { %p1105_p0 = pnand %p1104_p10, %p1100_p5 }
  0x3b   : > { %1108 = shalt.err (!%p1105_p0)
}
  0x3c   : > { %991 = dma.hbm_to_vmem [thread:$0]  (!%p1350_p13), %s256_s14, 768, %s258_s30, %s246_s23, %s1244_s18, %s1244_s18, %s1245_s12  }
  0x3d   : > { %269 = sbr.rel (%p1372_p2) target bundleno = 854 (0x356), region = 40  ;;  %s1398_s0 = sand.u32 (!%p1372_p2), 1, %s1226_s22  }
  0x3e   : > { %s1401_s10 = smul.u32 (!%p1372_p2), 48, %s1398_s0  ;;  %s272_s27 = scalar_lea.sflag (!%p1372_p2), [#allocation8], %s1398_s0 }
  0x40   : > { %s1405_s13 = scalar_lea.vmem (!%p1372_p2), [#allocation7], %s1401_s10 }
  0x42   : > { %1205 = dma.done.wait (%p1325_p6), %s272_s27, 768  }
  0x43   : > { %1207 = vsyncadd (%p1325_p6), %s272_s27, 4294966528  ;;  %s282_s23 = scalar_lea.sflag [#allocation11], %s1398_s0  ;;  %s1413_s30 = scalar_lea.vmem [#allocation10], %s1401_s10 }
  0x44   : > { %1209 = dma.done.wait (%p1325_p6), %s282_s23, 768  }
  0x45   : > { %1211 = vsyncadd (%p1325_p6), %s282_s23, 4294966528  ;;  %vm410_vm0 = vcmask 253952   ;;  %vm412_vm1 = vcmask 57344   ;;  %v1246_v0 = vmov 0.0   ;;  %vm1767_vm2 = vcmask 0   ;;  %s910_s12 = sshll.u32 %s1398_s0, 3 }
  0x46   : > { %411 = vst.msk [vmem:[#allocation3] sm:$0x1] %vm410_vm0, %v1246_v0  ;;  %v336_v1 = vld [vmem:[%s1757_s2 + $0x28] sm:$0xff]  ;;  %v335_v2 = vld [vmem:[%s1757_s2 + $0x20] sm:$0xff]  ;;  %v334_v3 = vld [vmem:[%s1757_s2 + $0x18] sm:$0xff]  ;;  %vm337_vm3 = vcmask 392192  }
  0x47   : > { %413 = vst.msk [vmem:[#allocation4] sm:$0x1] %vm412_vm1, %v1246_v0  ;;  %939 = vmatpush.msra.mxu3 %v336_v1  ;;  %937 = vmatpush.msra.mxu1 %v336_v1  ;;  %v398_v4 = vld [vmem:[%s1413_s30] sm:$0xff]  ;;  %v399_v5 = vld [vmem:[%s1413_s30 + $0x8] sm:$0xff]  ;;  %v400_v6 = vld [vmem:[%s1413_s30 + $0x10] sm:$0xff]  ;;  %s1442_s17 = scalar_lea.vmem [#allocation12], %s1401_s10 }
  0x48   : > { %414 = vst.msk [vmem:[#allocation5] sm:$0x1] %vm412_vm1, %v1246_v0  ;;  %938 = vmatpush.msra.mxu2 %v336_v1  ;;  %366 = vmatpush.msra.mxu0 %v336_v1  ;;  %v401_v7 = vld [vmem:[%s1413_s30 + $0x18] sm:$0xff]  ;;  %v402_v9 = vld [vmem:[%s1413_s30 + $0x20] sm:$0xff]  ;;  %v403_v10 = vld [vmem:[%s1413_s30 + $0x28] sm:$0xff]  ;;  %vm391_vm4 = vcmask 261120  }
  0x49   : > { %416 = vst.msk [vmem:[#allocation6] sm:$0x1] %vm1767_vm2, %v1246_v0  ;;  %942 = vmatpush.msra.mxu3 %v335_v2  ;;  %940 = vmatpush.msra.mxu1 %v335_v2  ;;  %v333_v8 = vld [vmem:[%s1757_s2 + $0x10] sm:$0xff]  ;;  %v332_v11 = vld [vmem:[%s1757_s2 + $0x8] sm:$0xff]  ;;  %v331_v12 = vld [vmem:[%s1757_s2] sm:$0xff]  ;;  %s1487_s27 = scalar_lea.vmem [#allocation13], %s910_s12 }
  0x4a   : > { %404 = vst.msk [vmem:[%s1442_s17] sm:$0xff] %vm337_vm3, %v398_v4  ;;  %941 = vmatpush.msra.mxu2 %v335_v2  ;;  %367 = vmatpush.msra.mxu0 %v335_v2  ;;  %v329_v13 = vld [vmem:[%s1405_s13 + $0x20] sm:$0xff]  ;;  %v326_v14 = vld [vmem:[%s1405_s13 + $0x8] sm:$0xff]  ;;  %v328_v15 = vld [vmem:[%s1405_s13 + $0x18] sm:$0xff]  ;;  %s1491_s23 = smov 1  }
  0x4b   : > { %405 = vst.msk [vmem:[%s1442_s17 + $0x8] sm:$0xff] %vm337_vm3, %v399_v5  ;;  %945 = vmatpush.msra.mxu3 %v334_v3  ;;  %943 = vmatpush.msra.mxu1 %v334_v3  ;;  %v325_v16 = vld [vmem:[%s1405_s13] sm:$0xff]  ;;  %v330_v17 = vld [vmem:[%s1405_s13 + $0x28] sm:$0xff]  ;;  %v327_v18 = vld [vmem:[%s1405_s13 + $0x10] sm:$0xff]  ;;  %s1489_s13 = smov 999.0  }
  0x4c   : > { %406 = vst.msk [vmem:[%s1442_s17 + $0x10] sm:$0xff] %vm337_vm3, %v400_v6  ;;  %944 = vmatpush.msra.mxu2 %v334_v3  ;;  %368 = vmatpush.msra.mxu0 %v334_v3 }
  0x4d   : > { %407 = vst.msk [vmem:[%s1442_s17 + $0x18] sm:$0xff] %vm337_vm3, %v401_v7  ;;  %948 = vmatpush.msra.mxu3 %v333_v8  ;;  %946 = vmatpush.msra.mxu1 %v333_v8 }
  0x4e   : > { %408 = vst.msk [vmem:[%s1442_s17 + $0x20] sm:$0xff] %vm337_vm3, %v402_v9  ;;  %947 = vmatpush.msra.mxu2 %v333_v8  ;;  %369 = vmatpush.msra.mxu0 %v333_v8 }
  0x4f   : > { %409 = vst.msk [vmem:[%s1442_s17 + $0x28] sm:$0xff] %vm337_vm3, %v403_v10  ;;  %951 = vmatpush.msra.mxu3 %v332_v11  ;;  %949 = vmatpush.msra.mxu1 %v332_v11 }
  0x50   : > { %950 = vmatpush.msra.mxu2 %v332_v11  ;;  %370 = vmatpush.msra.mxu0 %v332_v11 }
  0x51   : > { %954 = vmatpush.msra.mxu3 %v331_v12  ;;  %952 = vmatpush.msra.mxu1 %v331_v12 }
  0x52   : > { %915 = vmatmul.msk.f32.vlgmr.msra.gmra.mxu3 %vm337_vm3, %v329_v13  ;;  %912 = vmatmul.msk.f32.vlgmr.msra.gmra.mxu1 %vm337_vm3, %v326_v14 }
  0x53   : > { %953 = vmatpush.msra.mxu2 %v331_v12  ;;  %371 = vmatpush.msra.mxu0 %v331_v12 }
  0x54   : > { %914 = vmatmul.msk.f32.vlgmr.msra.gmra.mxu2 %vm337_vm3, %v328_v15  ;;  %911 = vmatmul.msk.f32.vlgmr.msra.gmra.mxu0 %vm337_vm3, %v325_v16 }
  0x5a   : > { %916 = vmatmul.msk.f32.gmra.mxu3 %vm337_vm3, %v330_v17  ;;  %913 = vmatmul.msk.f32.gmra.mxu1 %vm337_vm3, %v327_v18 }
  0xcf   : > { %v376_v19 = vpop.f32.mrf.mxu1 }
  0xd0   : > { %393 = vst.msk [vmem:[#allocation2 + $0x8] sm:$0xff] %vm391_vm4, %v376_v19 }
  0xd1   : > { %v373_v20 = vpop.f32.mrf.mxu0 }
  0xd2   : > { %392 = vst.msk [vmem:[#allocation2] sm:$0xff] %vm391_vm4, %v373_v20 }
  0xd5   : > { %v385_v21 = vpop.f32.mrf.mxu3 }
  0xd6   : > { %396 = vst.msk [vmem:[#allocation2 + $0x20] sm:$0xff] %vm391_vm4, %v385_v21 }
  0xd7   : > { %v379_v22 = vpop.f32.mrf.mxu1  ;;  %v382_v23 = vpop.f32.mrf.mxu2 }
  0xd8   : > { %394 = vst.msk [vmem:[#allocation2 + $0x10] sm:$0xff] %vm391_vm4, %v379_v22 }
  0xd9   : > { %395 = vst.msk [vmem:[#allocation2 + $0x18] sm:$0xff] %vm391_vm4, %v382_v23 }
  0xdd   : > { %v388_v24 = vpop.f32.mrf.mxu3 }
  0xde   : > { %397 = vst.msk [vmem:[#allocation2 + $0x28] sm:$0xff] %vm391_vm4, %v388_v24 }
  0xdf LB: >> { %v506_v26 = vld [vmem:[#allocation2 + $0x20] sm:$0xff]  ;;  %v431_v27 = vlaneseq  ;;  %s424_s30 = smul.u32 5, %s1242_s23  ;;  %v504_v33 = vld [vmem:[#allocation2 + $0x10] sm:$0xff]  ;;  %v503_v39 = vld [vmem:[#allocation2 + $0x8] sm:$0xff]  ;;  %v1247_v43 = vmov 0.0   ;;  %v1248_v21 = vmov 48.0   ;;  %s1242_s23 = sphi %s1491_s23, %s422_s23   ;;  %s1238_s13 = sphi %s1489_s13, %s1782_s13  }
  0xe0   : >> { %v505_v28 = vld [vmem:[#allocation2 + $0x18] sm:$0xff]  ;;  %v502_v42 = vld [vmem:[#allocation2] sm:$0xff]  ;;  %v606_v9 = vld [vmem:[%s1758_s3 + $0x10] sm:$0xff]  ;;  %1056 = vrcp.f32 %v1248_v21  ;;  %s422_s23 = sadd.s32 1, %s1242_s23  }
  0xe1   : >> { %v1501_v29 = vld [vmem:[%s1442_s17] sm:$0xff]  ;;  %v432_v30 = vshrl.u32 %v431_v27, 7  ;;  %v1503_v31 = vand.u32 127, %v431_v27  ;;  %v1506_v32 = vld [vmem:[%s1442_s17 + $0x10] sm:$0xff]  ;;  %v1510_v34 = vstv %s424_s30  ;;  %v1528_v40 = vld [vmem:[%s1442_s17 + $0x8] sm:$0xff]  ;;  %p691_p6 = scmp.lt.s32.totalorder %s424_s30, 40 }
  0xe2   : >> { %vm472_vm6 = vcmp.gt.f32.partialorder %v1501_v29, 0.0  ;;  %v1517_v36 = vld [vmem:[%s1442_s17 + $0x20] sm:$0xff]  ;;  %vm474_vm11 = vcmp.gt.f32.partialorder %v1506_v32, 0.0  ;;  %v1541_v47 = vld [vmem:[%s1442_s17 + $0x18] sm:$0xff]  ;;  %v1558_v53 = vld [vmem:[%s1442_s17 + $0x28] sm:$0xff]  ;;  %p419_p2 = scmp.ge.s32.totalorder %s422_s23, 8  }
  0xe3   : >> { %vm465_vm5 = vcmp.eq.s32.totalorder %v1503_v31, 0  ;;  %v434_v35 = vadd.s32 16, %v432_v30  ;;  %vm440_vm7 = vcmp.eq.s32.totalorder %v432_v30, %v1503_v31  ;;  %vm459_vm8 = vcmp.lt.s32.totalorder %v432_v30, %v1510_v34  ;;  %v607_v8 = vld [vmem:[%s1758_s3 + $0x18] sm:$0xff]  ;;  %v605_v11 = vld [vmem:[%s1758_s3 + $0x8] sm:$0xff]  ;;  %v604_v12 = vld [vmem:[%s1758_s3] sm:$0xff]  ;;  %723 = vst [vmem:[%s1487_s27] sm:$0xff] (%p419_p2), %v1246_v0  ;;  %s976_s30 = smul.u32 (%p419_p2), 48, %s1307_s25 }
  0xe4   : >> { %v436_v37 = vadd.s32 32, %v432_v30  ;;  %v433_v38 = vadd.s32 8, %v432_v30  ;;  %vm466_vm9 = vmand %vm459_vm8, %vm465_vm5  ;;  %v435_v41 = vadd.s32 24, %v432_v30  ;;  %v917_v44 = vsel %vm440_vm7, 1.0, %v1247_v43  ;;  %624 = vmatpush.msra.mxu1 %v607_v8  ;;  %s733_s19 = scalar_lea.sflag (%p419_p2), [#allocation9], %s1398_s0 }
  0xe5   : >> { %v507_v25 = vld [vmem:[#allocation2 + $0x28] sm:$0xff]  ;;  %vm461_vm10 = vcmp.lt.s32.totalorder %v434_v35, %v1510_v34  ;;  %vm478_vm12 = vmand %vm466_vm9, %vm472_vm6  ;;  %vm442_vm13 = vcmp.eq.s32.totalorder %v434_v35, %v1503_v31  ;;  %vm476_vm6 = vcmp.gt.f32.partialorder %v1517_v36, 0.0  ;;  %v437_v50 = vadd.s32 40, %v432_v30  ;;  %s749_s14 = scalar_lea.hbm (%p419_p2), %s1760_s5, %s976_s30 }
  0xe6   : >> { %536 = vmatpush.msra.mxu0 %v507_v25  ;;  %955 = vmatpush.msra.mxu2 %v507_v25  ;;  %vm463_vm14 = vcmp.lt.s32.totalorder %v436_v37, %v1510_v34  ;;  %v484_v45 = vsel %vm478_vm12, 1.0, %v1501_v29  ;;  %vm468_vm15 = vmand %vm461_vm10, %vm465_vm5  ;;  %vm444_vm9 = vcmp.eq.s32.totalorder %v436_v37, %v1503_v31  ;;  %vm460_vm2 = vcmp.lt.s32.totalorder %v433_v38, %v1510_v34  ;;  %s752_s15 = sshll.u32 (%p419_p2), %s749_s14, 4  ;;  %s753_s15 = int_to_ptr.hbm [resolvable:$true] %s752_s15 }
  0xe7   : >> { %956 = vmatpush.msra.mxu3 %v507_v25  ;;  %v490_v46 = vmul.f32 0.5, %v484_v45  ;;  %vm480_vm8 = vmand %vm468_vm15, %vm474_vm11  ;;  %v919_v48 = vsel %vm442_vm13, 1.0, %v1247_v43  ;;  %vm473_vm10 = vcmp.gt.f32.partialorder %v1528_v40, 0.0  ;;  %vm441_vm12 = vcmp.eq.s32.totalorder %v433_v38, %v1503_v31  ;;  %625 = vmatpush.msra.mxu1 %v606_v9  ;;  %s1138_s20 = sshra.s32 (%p419_p2), %s753_s15, 4  ;;  %s1139_s20 = int_to_ptr.hbm [resolvable:$true] %s1138_s20 }
  0xe8   : >> { %537 = vmatpush.msra.mxu0 %v506_v26  ;;  %957 = vmatpush.msra.mxu2 %v506_v26  ;;  %v486_v49 = vsel %vm480_vm8, 1.0, %v1506_v32  ;;  %vm470_vm7 = vmand %vm463_vm14, %vm465_vm5  ;;  %vm462_vm13 = vcmp.lt.s32.totalorder %v435_v41, %v1510_v34  ;;  %v921_v54 = vsel %vm444_vm9, 1.0, %v1247_v43  ;;  %vm475_vm15 = vcmp.gt.f32.partialorder %v1541_v47, 0.0  ;;  %s1140_s28 = scalar_lea.hbm (%p419_p2), %s1139_s20, 48  ;;  %p1145_p7 = scmp.lt.s32.totalorder (%p419_p2), %s1139_s20, %s1760_s5 }
  0xe9   : >> { %958 = vmatpush.msra.mxu3 %v506_v26  ;;  %v1551_v51 = vadd.f32 %v917_v44, %v490_v46  ;;  %v492_v52 = vmul.f32 0.5, %v486_v49  ;;  %vm482_vm11 = vmand %vm470_vm7, %vm476_vm6  ;;  %vm443_vm8 = vcmp.eq.s32.totalorder %v435_v41, %v1503_v31  ;;  %vm464_vm9 = vcmp.lt.s32.totalorder %v437_v50, %v1510_v34  ;;  %626 = vmatpush.msra.mxu1 %v605_v11  ;;  %p1141_p3 = scmp.ne.s32.totalorder (%p419_p2), %s1139_s20, %s1140_s28 }
  0xea   : >> { %538 = vmatpush.msra.mxu0 %v505_v28  ;;  %959 = vmatpush.msra.mxu2 %v505_v28  ;;  %v488_v55 = vsel %vm482_vm11, 1.0, %v1517_v36  ;;  %vm467_vm14 = vmand %vm460_vm2, %vm465_vm5  ;;  %v918_v58 = vsel %vm441_vm12, 1.0, %v1247_v43  ;;  %vm477_vm7 = vcmp.gt.f32.partialorder %v1558_v53, 0.0  ;;  %vm445_vm11 = vcmp.eq.s32.totalorder %v437_v50, %v1503_v31 }
  0xeb   : >> { %960 = vmatpush.msra.mxu3 %v505_v28  ;;  %v1570_v56 = vadd.f32 %v919_v48, %v492_v52  ;;  %v494_v57 = vmul.f32 0.5, %v488_v55  ;;  %vm479_vm6 = vmand %vm467_vm14, %vm473_vm10  ;;  %v920_v62 = vsel %vm443_vm8, 1.0, %v1247_v43  ;;  %v922_v3 = vsel %vm445_vm11, 1.0, %v1247_v43  ;;  %627 = vmatpush.msra.mxu1 %v604_v12  ;;  %v1057_v28 = vpop.eup %1056  ;;  %p1142_p4 = pnand (%p419_p2), %p1141_p3, %p1332_p11 }
  0xec   : >> { %539 = vmatpush.msra.mxu0 %v504_v33  ;;  %961 = vmatpush.msra.mxu2 %v504_v33  ;;  %v485_v59 = vsel %vm479_vm6, 1.0, %v1528_v40  ;;  %vm469_vm2 = vmand %vm462_vm13, %vm465_vm5  ;;  %v597_v41 = vmul.f32 48.0, %v1057_v28 }
  0xed   : >> { %962 = vmatpush.msra.mxu3 %v504_v33  ;;  %v1584_v60 = vadd.f32 %v921_v54, %v494_v57  ;;  %v491_v61 = vmul.f32 0.5, %v485_v59  ;;  %vm481_vm10 = vmand %vm469_vm2, %vm475_vm15  ;;  %vm601_vm2 = vweird.f32 %v1057_v28  ;;  %p1143_p5 = pneg (%p419_p2), %p1142_p4 }
  0xee   : >> { %540 = vmatpush.msra.mxu0 %v503_v39  ;;  %963 = vmatpush.msra.mxu2 %v503_v39  ;;  %v487_v63 = vsel %vm481_vm10, 1.0, %v1541_v47  ;;  %vm471_vm12 = vmand %vm464_vm9, %vm465_vm5  ;;  %v598_v48 = vsub.f32 1.0, %v597_v41 }
  0xef   : >> { %964 = vmatpush.msra.mxu3 %v503_v39  ;;  %v1592_v1 = vadd.f32 %v918_v58, %v491_v61  ;;  %v493_v2 = vmul.f32 0.5, %v487_v63  ;;  %vm483_vm13 = vmand %vm471_vm12, %vm477_vm7 }
  0xf0   : >> { %541 = vmatpush.msra.mxu0 %v502_v42  ;;  %965 = vmatpush.msra.mxu2 %v502_v42  ;;  %v489_v4 = vsel %vm483_vm13, 1.0, %v1558_v53  ;;  %v599_v52 = vmul.f32 %v1057_v28, %v598_v48  ;;  %v709_v48 = vld [vmem:[#allocation3] sm:$0x1] }
  0xf1   : >> { %966 = vmatpush.msra.mxu3 %v502_v42  ;;  %923 = vmatmul.msk.f32.vlgmr.msra.gmra.mxu0 %vm337_vm3, %v1551_v51  ;;  %v1595_v5 = vadd.f32 %v920_v62, %v493_v2  ;;  %v495_v6 = vmul.f32 0.5, %v489_v4  ;;  %v608_v2 = vld [vmem:[%s1759_s4] sm:$0x1] }
  0xf2   : >> { %925 = vmatmul.msk.f32.vlgmr.msra.gmra.mxu2 %vm337_vm3, %v1570_v56  ;;  %927 = vmatmul.msk.f32.vlgmr.msra.gmra.mxu3 %vm337_vm3, %v1584_v60  ;;  %v600_v57 = vadd.f32 %v1057_v28, %v599_v52 }
  0xf3   : >> { %v1599_v7 = vadd.f32 %v922_v3, %v495_v6 }
  0xf4   : >> { %v602_v61 = vsel %vm601_vm2, %v1057_v28, %v600_v57 }
  0xf9   : >> { %924 = vmatmul.msk.f32.gmra.mxu0 %vm337_vm3, %v1592_v1 }
  0xfa   : >> { %926 = vmatmul.msk.f32.gmra.mxu2 %vm337_vm3, %v1595_v5  ;;  %928 = vmatmul.msk.f32.gmra.mxu3 %vm337_vm3, %v1599_v7 }
 0x16e   : >> { %v543_v10 = vpop.f32.mrf.mxu0 }
 0x16f   : >> { %v567_v13 = vmul.f32 0.2, %v543_v10  ;;  %vm561_vm5 = vcmp.ge.f32.partialorder %v543_v10, 0.0 }
 0x171   : >> { %v573_v18 = vsel %vm561_vm5, %v543_v10, %v567_v13 }
 0x172   : >> { %v579_v23 = vsel %vm391_vm4, %v573_v18, 0.0 }
 0x175   : >> { %v549_v14 = vpop.f32.mrf.mxu2  ;;  %v555_v17 = vpop.f32.mrf.mxu3 }
 0x176   : >> { %v546_v15 = vpop.f32.mrf.mxu0  ;;  %v569_v19 = vmul.f32 0.2, %v549_v14  ;;  %vm563_vm15 = vcmp.ge.f32.partialorder %v549_v14, 0.0  ;;  %v571_v24 = vmul.f32 0.2, %v555_v17  ;;  %vm565_vm6 = vcmp.ge.f32.partialorder %v555_v17, 0.0 }
 0x177   : >> { %vm562_vm14 = vcmp.ge.f32.partialorder %v546_v15, 0.0  ;;  %v568_v16 = vmul.f32 0.2, %v546_v15 }
 0x178   : >> { %v575_v25 = vsel %vm563_vm15, %v549_v14, %v569_v19  ;;  %v577_v33 = vsel %vm565_vm6, %v555_v17, %v571_v24  ;;  %vm1781_vm15 = vcmask 0  }
 0x179   : >> { %v574_v20 = vsel %vm562_vm14, %v546_v15, %v568_v16  ;;  %v582_v31 = vsel %vm391_vm4, %v575_v25, 0.0  ;;  %v586_v44 = vsel %vm391_vm4, %v577_v33, 0.0 }
 0x17a   : >> { %v580_v22 = vsel %vm391_vm4, %v574_v20, 0.0 }
 0x17b   : >> { %v581_v26 = vadd.f32 %v580_v22, %v579_v23 }
 0x17d   : >> { %v552_v27 = vpop.f32.mrf.mxu2  ;;  %v558_v34 = vpop.f32.mrf.mxu3  ;;  %v583_v37 = vadd.f32 %v582_v31, %v581_v26 }
 0x17e   : >> { %vm564_vm8 = vcmp.ge.f32.partialorder %v552_v27, 0.0  ;;  %v570_v30 = vmul.f32 0.2, %v552_v27  ;;  %vm566_vm9 = vcmp.ge.f32.partialorder %v558_v34, 0.0  ;;  %v572_v38 = vmul.f32 0.2, %v558_v34 }
 0x180   : >> { %v576_v35 = vsel %vm564_vm8, %v552_v27, %v570_v30  ;;  %v578_v43 = vsel %vm566_vm9, %v558_v34, %v572_v38 }
 0x181   : >> { %v584_v39 = vsel %vm391_vm4, %v576_v35, 0.0  ;;  %v588_v46 = vsel %vm391_vm4, %v578_v43, 0.0 }
 0x182   : >> { %v585_v42 = vadd.f32 %v584_v39, %v583_v37 }
 0x184   : >> { %v587_v45 = vadd.f32 %v586_v44, %v585_v42 }
 0x186   : >> { %v589_v49 = vadd.f32 %v588_v46, %v587_v45 }
 0x188   : >> { %v590_v50 = vrot.slane %v589_v49, 4 }
 0x18a   : >> { %v591_v54 = vadd.f32 %v590_v50, %v589_v49 }
 0x18c   : >> { %v592_v55 = vrot.slane %v591_v54, 2 }
 0x18e   : >> { %v593_v58 = vadd.f32 %v592_v55, %v591_v54 }
 0x190   : >> { %v594_v59 = vrot.slane %v593_v58, 1 }
 0x192   : >> { %v595_v62 = vadd.f32 %v594_v59, %v593_v58 }
 0x194   : >> { %v1623_v63 = vmul.f32 %v602_v61, %v595_v62 }
 0x196   : >> { %929 = vmatmul.msk.f32.vlgmr.msra.gmra.mxu1 %vm391_vm4, %v1623_v63 }
 0x213   : >> { %v629_v3 = vpop.f32.mrf.mxu1 }
 0x214   : >> { %v630_v4 = vadd.f32 %v629_v3, %v608_v2 }
 0x216   : >> { %v633_v6 = vmin.f32 %v630_v4, 20.0  ;;  %vm632_vm10 = vcmp.gt.f32.partialorder %v630_v4, 20.0 }
 0x218   : >> { %v634_v8 = vmul.f32 1.442695, %v633_v6 }
 0x21a   : >> { %1058 = vpow2.f32 %v634_v8 }
 0x220   : >> { %v1059_v9 = vpop.eup %1058 }
 0x221   : >> { %v636_v10 = vadd.f32 1.0, %v1059_v9  ;;  %v639_v11 = vmul.f32 -0.5, %v1059_v9  ;;  %v642_v13 = vand.u32 2147483647, %v1059_v9 }
 0x223   : >> { %1060 = vlog2.f32 %v636_v10  ;;  %v640_v12 = vadd.f32 1.0, %v639_v11  ;;  %vm643_vm7 = vcmp.lt.f32.partialorder %v642_v13, 0.0004427343 }
 0x225   : >> { %v641_v16 = vmul.f32 %v1059_v9, %v640_v12 }
 0x229   : >> { %v1061_v14 = vpop.eup %1060 }
 0x22a   : >> { %v638_v15 = vmul.f32 0.6931472, %v1061_v14 }
 0x22c   : >> { %v644_v17 = vsel %vm643_vm7, %v641_v16, %v638_v15 }
 0x22d   : >> { %v645_v18 = vsel %vm632_vm10, %v630_v4, %v644_v17 }
 0x22e   : >> { %v646_v19 = vsel %vm412_vm1, %v645_v18, 0.0 }
 0x22f   : >> { %647 = vadd.xlane.f32.xlu0 %v646_v19 }
 0x2a2   : >> { %v648_v20 = vpop.xlane.xlu0 %647 }
 0x2a3   : >> { %v649_v21 = vrot.slane %v648_v20, 4 }
 0x2a5   : >> { %v650_v22 = vadd.f32 %v649_v21, %v648_v20 }
 0x2a7   : >> { %v651_v23 = vrot.slane %v650_v22, 2 }
 0x2a9   : >> { %v652_v24 = vadd.f32 %v651_v23, %v650_v22 }
 0x2ab   : >> { %v653_v25 = vrot.slane %v652_v24, 1 }
 0x2ad   : >> { %v654_v26 = vadd.f32 %v653_v25, %v652_v24 }
 0x2af   : >> { %972 = vpush %v654_v26 }
 0x2e0   : >> { %s973_s26 = spop %972 }
 0x2e1   : >> { %s656_s29 = sadd.f32 8.0, %s973_s26 }
 0x2e3   : >> { %v657_v27 = vstv %s656_s29  ;;  %s1144_s29 = scalar_lea.hbm (%p419_p2), %s1760_s5, 96 }
 0x2e4   : >> { %1062 = vrcp.f32 %v657_v27  ;;  %v669_v33 = vand.u32 2147483648, %v657_v27  ;;  %v667_v35 = vand.u32 2147483647, %v657_v27  ;;  %vm663_vm12 = vweird.f32 %v657_v27  ;;  %p1146_p8 = scmp.lt.s32.totalorder (%p419_p2), %s1144_s29, %s1140_s28 }
 0x2e6   : >> { %v670_v38 = vor.u32 1.1754944e-38, %v669_v33  ;;  %vm668_vm5 = vcmp.eq.f32.partialorder %v667_v35, 8.507059e+37  ;;  %p1147_p10 = por (%p419_p2), %p1146_p8, %p1145_p7 }
 0x2e8   : > { %p1148_p0 = pnand (%p419_p2), %p1147_p10, %p1143_p5 }
 0x2ea   : >> { %v1063_v28 = vpop.eup %1062 }
 0x2eb   : >> { %v659_v30 = vmul.f32 %v1063_v28, %v657_v27  ;;  %vm664_vm11 = vweird.f32 %v1063_v28 }
 0x2ec   : >> { %vm665_vm13 = vmor %vm663_vm12, %vm664_vm11 }
 0x2ed   : >> { %v660_v31 = vsub.f32 1.0, %v659_v30 }
 0x2ef   : >> { %v661_v34 = vmul.f32 %v1063_v28, %v660_v31 }
 0x2f1   : >> { %v662_v37 = vadd.f32 %v1063_v28, %v661_v34 }
 0x2f3   : >> { %v666_v39 = vsel %vm665_vm13, %v1063_v28, %v662_v37 }
 0x2f4   : >> { %v671_v41 = vsel %vm668_vm5, %v670_v38, %v666_v39 }
 0x2f5   : >> { %974 = vpush %v671_v41 }
 0x326   : >> { %s975_s10 = spop %974 }
 0x327   : >> { %s1631_s12 = smul.f32 8.0, %s975_s10 }
 0x329   : >> { %p690_p13 = scmp.lt.f32.partialorder %s1631_s12, %s1238_s13 }
 0x32b   : >> { %p1637_p1 = pnand %p691_p6, %p690_p13 }
 0x32d   : >> { %s930_s16 = scalar_select %p1637_p1, 0, 1 }
 0x32e   : >> { %s931_s18 = scalar_select %p1637_p1, -1.0, %s1631_s12  }
 0x32f   : >> { %v695_v42 = vstv %s930_s16 }
 0x330   : >> { %vm696_vm14 = vcmp.eq.s32.totalorder %v695_v42, 1  ;;  %s1782_s13 = smov %s931_s18 }
 0x331   : >> { %v697_v43 = vsel %vm696_vm14, %v1551_v51, %v1501_v29  ;;  %v698_v44 = vsel %vm696_vm14, %v1592_v1, %v1528_v40  ;;  %v699_v45 = vsel %vm696_vm14, %v1570_v56, %v1506_v32  ;;  %v700_v46 = vsel %vm696_vm14, %v1595_v5, %v1541_v47  ;;  %v712_v40 = vld [vmem:[#allocation4] sm:$0x1]  ;;  %v715_v51 = vld [vmem:[#allocation5] sm:$0x1]  ;;  %v719_v1 = vld [vmem:[#allocation6] sm:$0x1] }
 0x332   : >> { %703 = vst.msk [vmem:[%s1442_s17] sm:$0xff] %vm337_vm3, %v697_v43  ;;  %v701_v29 = vsel %vm696_vm14, %v1584_v60, %v1517_v36  ;;  %v702_v32 = vsel %vm696_vm14, %v1599_v7, %v1558_v53  ;;  %v672_v56 = vmul.f32 %v671_v41, %v645_v18  ;;  %v710_v47 = vsel %vm696_vm14, %v1623_v63, %v709_v48  ;;  %s750_s13 = sshll.u32 (%p419_p2), %s1442_s17, 4  ;;  %s751_s13 = int_to_ptr.vmem [resolvable:$true] %s750_s13 }
 0x333   : >> { %704 = vst.msk [vmem:[%s1442_s17 + $0x8] sm:$0xff] %vm337_vm3, %v698_v44  ;;  %v713_v36 = vsel %vm696_vm14, %v645_v18, %v712_v40  ;;  %v718_v5 = vstv %s1631_s12 }
 0x334   : >> { %705 = vst.msk [vmem:[%s1442_s17 + $0x10] sm:$0xff] %vm337_vm3, %v699_v45  ;;  %v716_v60 = vsel %vm696_vm14, %v672_v56, %v715_v51  ;;  %v720_v53 = vsel %vm696_vm14, %v718_v5, %v719_v1 }
 0x335   : >> { %706 = vst.msk [vmem:[%s1442_s17 + $0x18] sm:$0xff] %vm337_vm3, %v700_v46 }
 0x336   : >> { %707 = vst.msk [vmem:[%s1442_s17 + $0x20] sm:$0xff] %vm337_vm3, %v701_v29 }
 0x337   : >> { %708 = vst.msk [vmem:[%s1442_s17 + $0x28] sm:$0xff] %vm337_vm3, %v702_v32  ;;  %vm1783_vm3 = vcmask (%p419_p2), 0  }
 0x338   : >> { %711 = vst.msk [vmem:[#allocation3] sm:$0x1] %vm410_vm0, %v710_v47 }
 0x339   : >> { %714 = vst.msk [vmem:[#allocation4] sm:$0x1] %vm412_vm1, %v713_v36  ;;  %421 = sbr.rel (!%p419_p2) target bundleno = 223 (0xdf), region = 122 }
 0x33a   : >> { %717 = vst.msk [vmem:[#allocation5] sm:$0x1] %vm412_vm1, %v716_v60 }
 0x33b   : >> { %721 = vst.msk [vmem:[#allocation6] sm:$0x1] %vm1781_vm15, %v720_v53 }
 0x33f   : > { %v724_v7 = vld [vmem:[#allocation3] sm:$0x1] }
 0x340   : > { %v726_v49 = vld [vmem:[#allocation4] sm:$0x1]  ;;  %725 = vst.msk [vmem:[%s1487_s27] sm:$0x1] %vm410_vm0, %v724_v7 }
 0x341   : > { %v728_v50 = vld [vmem:[#allocation5] sm:$0x1]  ;;  %727 = vst.msk [vmem:[%s1487_s27 + $0x1] sm:$0x1] %vm412_vm1, %v726_v49 }
 0x342   : > { %v730_v52 = vld [vmem:[#allocation6] sm:$0x1]  ;;  %729 = vst.msk [vmem:[%s1487_s27 + $0x2] sm:$0x1] %vm412_vm1, %v728_v50 }
 0x343   : > { %731 = vst.msk [vmem:[%s1487_s27 + $0x3] sm:$0x1] %vm1783_vm3, %v730_v52 }
 0x344   : > { %1151 = shalt.err (!%p1148_p0)
}
 0x345   : > { %s1249_s7 = smov 128   ;;  %s1250_s16 = smov 8  }
 0x346   : > { %981 = dma.vmem_to_hbm [thread:$0]  (%p1332_p11), %s751_s13, 768, %s753_s15, %s733_s19, %s1249_s7, %s1249_s7, %s1250_s16  }
 0x347   : > { %s934_s18 = sshll.u32 %s1307_s25, 3  ;;  %s767_s30 = sshll.u32 %s1487_s27, 4  ;;  %s768_s30 = int_to_ptr.vmem [resolvable:$true] %s767_s30 }
 0x348   : > { %s765_s14 = scalar_lea.hbm %s1761_s6, %s934_s18  ;;  %s738_s28 = scalar_lea.sflag [#allocation14], %s1398_s0 }
 0x349   : > { %s769_s20 = sshll.u32 %s765_s14, 4  ;;  %s1172_s25 = scalar_lea.hbm %s1761_s6, 16  ;;  %s770_s20 = int_to_ptr.hbm [resolvable:$true] %s769_s20 }
 0x34a   : > { %s1166_s17 = sshra.s32 %s770_s20, 4  ;;  %s1167_s17 = int_to_ptr.hbm [resolvable:$true] %s1166_s17 }
 0x34b   : > { %s1168_s26 = scalar_lea.hbm %s1167_s17, 8  ;;  %p1173_p2 = scmp.lt.s32.totalorder %s1167_s17, %s1761_s6 }
 0x34c   : > { %p1169_p6 = scmp.ne.s32.totalorder %s1167_s17, %s1168_s26  ;;  %p1174_p3 = scmp.lt.s32.totalorder %s1172_s25, %s1168_s26 }
 0x34e   : > { %p1170_p13 = pnand %p1169_p6, %p1332_p11  ;;  %p1175_p4 = por %p1174_p3, %p1173_p2 }
 0x350   : > { %p1171_p1 = pneg %p1170_p13 }
 0x352   : > { %p1176_p5 = pnand %p1175_p4, %p1171_p1 }
 0x354   : > { %1179 = shalt.err (!%p1176_p5)
}
 0x355   : > { %982 = dma.vmem_to_hbm [thread:$0]  (%p1332_p11), %s768_s30, 128, %s770_s20, %s738_s28  }
 0x356 PF: > { %s781_s0 = sand.u32 1, %s1222_s21   ;;  %p993_p7 = pnand %p906_p9, %p1336_p12 }
 0x357   : > { %s782_s15 = scalar_lea.sflag [#allocation9], %s781_s0 }
 0x358   : > { %p994_p8 = pneg %p993_p7 }
 0x35a   : > { %1213 = dma.done.wait (%p994_p8), %s782_s15, 768  }
 0x35b   : > { %1215 = vsyncadd (%p994_p8), %s782_s15, 4294966528  ;;  %s792_s19 = scalar_lea.sflag [#allocation14], %s781_s0 }
 0x35c   : > { %1217 = dma.done.wait (%p994_p8), %s792_s19, 128  }
 0x35d   : > { %1219 = vsyncadd (%p994_p8), %s792_s19, 4294967168  ;;  %s1784_s24 = sld [smem:[#allocation20_spill]]  ;;  %s1787_s21 = smov %s1226_s22 }
 0x35e   : > { %s1785_s12 = sld [smem:[#allocation19_spill]] }
 0x35f   : > { %s1786_s23 = sld [smem:[#allocation21_spill]] }
 0x363   : > { %p26_p11 = scmp.ge.s32.totalorder %s1784_s24, 4  }
 0x364   : > { %s1788_s22 = smov %s1785_s12 }
 0x365   :  { %28 = sbr.rel (!%p26_p11) target bundleno = 11 (0xb), region = 133 }
 0x36a   :  { %798 = vsyncpa [#allocation8], 1 }
 0x36b   :  { %800 = vsyncpa [#allocation8 + $0x1], 1 }
 0x36c   :  { %801 = vsyncpa [#allocation11], 1 }
 0x36d   :  { %803 = vsyncpa [#allocation11 + $0x1], 1 }
 0x36e   :  { %804 = vsyncpa [#allocation9], 1 }
 0x36f   :  { %806 = vsyncpa [#allocation9 + $0x1], 1 }
 0x370   :  { %807 = vsyncpa [#allocation14], 1 }
 0x371   :  { %809 = vsyncpa [#allocation14 + $0x1], 1 }

</bundles_post_ra>
